<compile_context>
chip_gen: v7x
topology: tpu7x:2x2x1
jax: 0.10.0
libtpu: 0.0.40
codegen_flags: <defaults>
</compile_context>

<pallas_src>
import functools

import jax
import jax.numpy as jnp
from jax import lax
from jax.experimental import pallas as pl
from jax.experimental.pallas import tpu as pltpu


def _round_up(x, m):
    return (x + m - 1) // m * m


def _leaky_relu(x, slope=0.01):
    # Single vmax instead of compare+select; valid for slope in (0,1) (fixed 0.01,
    # matching F.leaky_relu's default).
    return jnp.maximum(x, slope * x)


# ---------------------------------------------------------------------------
# Kernel 1 ("prep"), single grid step:
#   c_emb   = (CE @ E) @ Wc                      (MXU, f32 accumulation)
#   rating  = (RC @ c_emb) @ v                   (v = W_r.T @ w_rating, folded)
#   uu[d]   = sum_{edges k, dst_k == d} rating_k * E[src_k]
# Edges are pre-sorted by destination; seg_ref[d]..seg_ref[d+1] is d's segment.
# ---------------------------------------------------------------------------
def _prep_kernel(num_user,
                 seg_ref, src_ref,                       # SMEM (scalar prefetch)
                 E_ref, CE_ref, RC_ref, Wc_ref, v_ref,   # VMEM inputs
                 c_out_ref, uu_out_ref,                  # VMEM outputs
                 rat_ref):                               # VMEM scratch [Rp,1] f32
    cd = E_ref.dtype                                     # MXU compute dtype
    Dp = E_ref.shape[1]

    # c_emb = (CE_adj @ E) @ W_c^T   (W_c pre-transposed to [in, out])
    ce = jnp.dot(CE_ref[...], E_ref[...], preferred_element_type=jnp.float32)
    c_emb = jnp.dot(ce.astype(cd), Wc_ref[...], preferred_element_type=jnp.float32)
    c_out_ref[...] = c_emb.astype(c_out_ref.dtype)

    # Per-edge rating: (RC @ c_emb) @ v  -- MXU matmul then VPU mul + XLU reduce.
    rc = jnp.dot(RC_ref[...], c_emb.astype(cd), preferred_element_type=jnp.float32)
    rat_ref[...] = jnp.sum(rc * v_ref[...], axis=-1, keepdims=True)

    # SpecialSpmm: destination-sorted segment accumulation.  Rows >= num_user
    # (padding) stay exactly zero, so downstream leaky_relu/add are no-ops there.
    uu_out_ref[...] = jnp.zeros_like(uu_out_ref)

    def dst_body(d, carry):
        lo = seg_ref[d]
        hi = seg_ref[d + 1]

        def edge_body(k, acc):
            src = src_ref[k]
            e_row = E_ref[pl.ds(src, 1), :].astype(jnp.float32)     # [1, Dp]
            return acc + rat_ref[pl.ds(k, 1), :] * e_row            # [1, Dp]

        acc = lax.fori_loop(lo, hi, edge_body, jnp.zeros((1, Dp), jnp.float32))
        uu_out_ref[pl.ds(d, 1), :] = acc                            # one store/dst
        return carry

    lax.fori_loop(0, num_user, dst_body, 0)


# ---------------------------------------------------------------------------
# Kernel 2: tiled EC message; fused leaky_relu(uu)-add on user-row tiles only.
# ---------------------------------------------------------------------------
def _ec_kernel(u_tiles, ec_ref, c_ref, uu_ref, out_ref):
    ec = jnp.dot(ec_ref[...], c_ref[...], preferred_element_type=jnp.float32)
    ec = _leaky_relu(ec)

    @pl.when(pl.program_id(0) < u_tiles)
    def _():
        out_ref[...] = ec + _leaky_relu(uu_ref[...])

    @pl.when(pl.program_id(0) >= u_tiles)
    def _():
        out_ref[...] = ec


def att_layer_forward(E, CE_adj, EC_adj, RC_adj, UU_idx,
                      W_c, W_r, w_rating, num_user,
                      *, compute_dtype=jnp.bfloat16, row_tile=512):
    """Forward pass matching ATT_layer.forward. Returns f32 [num_nodes, emb_dim]."""
    N, D = E.shape
    C = CE_adj.shape[0]
    R = RC_adj.shape[0]

    cd = jnp.dtype(compute_dtype)

    Dp = _round_up(D, 128)                                   # lane-dense features
    Cp = _round_up(C, 128) if C < 128 else _round_up(C, 8)   # lane-dense K when small
    Rp = _round_up(R, 8)
    tile_n = min(row_tile, _round_up(N, 8))                  # row tile for kernel 2
    Np = _round_up(N, tile_n)
    Up = _round_up(num_user, tile_n)                         # uu padded to whole tiles
    u_tiles = Up // tile_n
    n_tiles = Np // tile_n

    def pad2(a, r, c, dt):
        a = a.astype(dt)
        if a.shape == (r, c):
            return a
        return jnp.pad(a, ((0, r - a.shape[0]), (0, c - a.shape[1])))

    E_p = pad2(E, Np, Dp, cd)
    CE_p = pad2(CE_adj, Cp, Np, cd)
    EC_p = pad2(EC_adj, Np, Cp, cd)
    # nn.Linear weights are [out, in]; pre-transpose to [in, out] (one-time).
    Wc_p = pad2(W_c.T, Dp, Dp, cd)
    # Fold R_transformer + rating_func: rating = (RC@c_emb) @ (W_r.T @ w_rating).
    v = W_r.T @ w_rating
    v_p = jnp.pad(v, (0, Dp - D)).reshape(1, Dp).astype(jnp.float32)

    # Destination-sorted UU edges -> per-destination segment offsets.
    uu_dst = UU_idx[0].astype(jnp.int32)
    uu_src = UU_idx[1].astype(jnp.int32)
    perm = jnp.argsort(uu_dst)
    dst_s = uu_dst[perm]
    # Clamp sources defensively (VMEM refs have no bounds checks); valid inputs
    # satisfy src < num_user (reference uses uu_dense @ E[:num_user]).
    src_s = jnp.clip(uu_src[perm], 0, num_user - 1)
    # seg[d] = first sorted-edge index with dst >= d; edges with dst >= num_user
    # (invalid) naturally fall outside every segment and are dropped.
    seg = jnp.searchsorted(dst_s, jnp.arange(num_user + 1)).astype(jnp.int32)
    # Permute rating rows to match the sorted edge order (r_emb is internal only).
    RC_p = pad2(RC_adj[perm], Rp, Cp, cd)

    # ---- kernel 1: c_emb + uu segment scatter -------------------------------
    try:
        vmem_cap = int(pltpu.get_tpu_info().vmem_capacity_bytes)
    except Exception:
        vmem_cap = 64 * 2**20          # conservative: v7x has 64 MiB / TensorCore
    itemsize = cd.itemsize
    io_bytes = ((E_p.size + CE_p.size + RC_p.size + Wc_p.size) * itemsize
                + v_p.size * 4
                + Cp * Dp * itemsize           # c_emb output
                + Up * Dp * 4)                 # uu output (f32)
    scratch_bytes = Rp * 128 * 4               # rat scratch (lane-padded)
    want = 2 * io_bytes + scratch_bytes + 8 * 2**20   # double-buffered + headroom
    vmem_limit = int(min(vmem_cap - 2 * 2**20, max(32 * 2**20, want)))

    def full(shape):
        return pl.BlockSpec(shape, lambda i, seg_r, src_r: (0,) * len(shape))

    c_emb, uu_msg = pl.pallas_call(
        functools.partial(_prep_kernel, num_user),
        out_shape=(jax.ShapeDtypeStruct((Cp, Dp), cd),
                   jax.ShapeDtypeStruct((Up, Dp), jnp.float32)),
        grid_spec=pltpu.PrefetchScalarGridSpec(
            num_scalar_prefetch=2,
            grid=(1,),
            in_specs=[full(E_p.shape), full(CE_p.shape), full(RC_p.shape),
                      full(Wc_p.shape), full(v_p.shape)],
            out_specs=[full((Cp, Dp)), full((Up, Dp))],
            scratch_shapes=[pltpu.VMEM((Rp, 1), jnp.float32)]),
        compiler_params=pltpu.CompilerParams(
            dimension_semantics=("arbitrary",),
            vmem_limit_bytes=vmem_limit),
    )(seg, src_s, E_p, CE_p, RC_p, Wc_p, v_p)

    # ---- kernel 2: tiled EC message + fused uu add on user tiles ------------
    out_full = pl.pallas_call(
        functools.partial(_ec_kernel, u_tiles),
        out_shape=jax.ShapeDtypeStruct((Np, Dp), jnp.float32),
        grid_spec=pltpu.PrefetchScalarGridSpec(
            num_scalar_prefetch=0,
            grid=(n_tiles,),
            in_specs=[pl.BlockSpec((tile_n, Cp), lambda i: (i, 0)),
                      pl.BlockSpec((Cp, Dp), lambda i: (0, 0)),
                      # Clamp: tiles past the user rows keep re-selecting the last
                      # uu tile, so the pipeline skips the redundant DMA and the
                      # pl.when above ignores the (unused) buffer contents.
                      pl.BlockSpec((tile_n, Dp),
                                   lambda i: (jnp.minimum(i, u_tiles - 1), 0))],
            out_specs=pl.BlockSpec((tile_n, Dp), lambda i: (i, 0))),
        compiler_params=pltpu.CompilerParams(
            dimension_semantics=("parallel",)),
    )(EC_p, c_emb, uu_msg)

    if Np == N and Dp == D:
        return out_full
    return out_full[:N, :D]


def att_layer_reference(E, CE_adj, EC_adj, RC_adj, UU_idx,
                        W_c, W_r, w_rating, num_user):
    """Pure-JAX f32 reference mirroring the PyTorch forward."""
    c_emb = (CE_adj @ E) @ W_c.T
    r_emb = (RC_adj @ c_emb) @ W_r.T
    r_rating = r_emb @ w_rating
    uu_dense = jnp.zeros((num_user, num_user), jnp.float32)
    uu_dense = uu_dense.at[UU_idx[0], UU_idx[1]].add(r_rating)
    uu_message = jax.nn.leaky_relu(uu_dense @ E[:num_user], 0.01)
    ec_message = jax.nn.leaky_relu(EC_adj @ c_emb, 0.01)
    return ec_message.at[:num_user].add(uu_message)


if __name__ == "__main__":
    # Small synthetic problem consistent with the module's forward.
    emb_dim = 32       # args.emb_dim
    num_user = 8       # args.num_user
    num_nodes = 16     # users + items
    num_C = 8          # number of "C" nodes
    num_R = 16         # number of ratings == nnz of the UU sparse matrix

    key = jax.random.PRNGKey(0)
    keys = jax.random.split(key, 8)

    E = jax.random.normal(keys[0], (num_nodes, emb_dim), jnp.float32)
    CE_adj = jax.random.uniform(keys[1], (num_C, num_nodes), jnp.float32)
    EC_adj = jax.random.uniform(keys[2], (num_nodes, num_C), jnp.float32)
    RC_adj = jax.random.uniform(keys[3], (num_R, num_C), jnp.float32)
    UU_idx = jax.random.randint(keys[4], (2, num_R), 0, num_user, jnp.int32)

    # PyTorch nn.Linear(bias=False) default init: U(-1/sqrt(in), 1/sqrt(in))
    bound = 1.0 / (emb_dim ** 0.5)
    W_c = jax.random.uniform(keys[5], (emb_dim, emb_dim), jnp.float32, -bound, bound)
    W_r = jax.random.uniform(keys[6], (emb_dim, emb_dim), jnp.float32, -bound, bound)
    w_rating = jax.random.uniform(keys[7], (emb_dim,), jnp.float32, -bound, bound)

    ref = att_layer_reference(E, CE_adj, EC_adj, RC_adj, UU_idx,
                              W_c, W_r, w_rating, num_user)

    # 1) f32 compute path: strict semantic check against the reference.
    out_f32 = att_layer_forward(E, CE_adj, EC_adj, RC_adj, UU_idx,
                                W_c, W_r, w_rating, num_user,
                                compute_dtype=jnp.float32)
    out_f32 = jax.block_until_ready(out_f32)
    assert out_f32.shape == (num_nodes, emb_dim)
    assert jnp.allclose(out_f32, ref, atol=1e-3, rtol=1e-3), "f32 mismatch vs reference"

    # 2) bf16 MXU inputs (f32 accumulation): production path; inputs lose
    #    mantissa bits so only a loose ballpark check vs the f32 reference.
    out_bf16 = att_layer_forward(E, CE_adj, EC_adj, RC_adj, UU_idx,
                                 W_c, W_r, w_rating, num_user,
                                 compute_dtype=jnp.bfloat16)
    out_bf16 = jax.block_until_ready(out_bf16)
    assert out_bf16.shape == (num_nodes, emb_dim)
    assert jnp.allclose(out_bf16, ref, atol=0.5, rtol=0.05), "bf16 mismatch vs reference"

    print("KERNEL_OK")
</pallas_src>

<mosaic_0001>
module attributes {stable_mosaic.version = 11 : i64} {
  func.func @_prep_kernel(%arg0: i32, %arg1: memref<9xi32, #tpu.memory_space<smem>>, %arg2: memref<16xi32, #tpu.memory_space<smem>>, %arg3: memref<16x128xf32, #tpu.memory_space<vmem>>, %arg4: memref<128x16xf32, #tpu.memory_space<vmem>>, %arg5: memref<16x128xf32, #tpu.memory_space<vmem>>, %arg6: memref<128x128xf32, #tpu.memory_space<vmem>>, %arg7: memref<1x128xf32, #tpu.memory_space<vmem>>, %arg8: memref<128x128xf32, #tpu.memory_space<vmem>>, %arg9: memref<16x128xf32, #tpu.memory_space<vmem>>, %arg10: memref<16x1xf32, #tpu.memory_space<vmem>>) attributes {dimension_semantics = [#tpu.dimension_semantics<arbitrary>], iteration_bounds = array<i64: 1>, scalar_prefetch = 2 : i64, scratch_operands = 1 : i64, tpu.core_type = #tpu.core_type<tc>, window_params = [{pipeline_mode = #tpu.pipeline_mode<synchronous>, transform_indices = @transform_0, window_bounds = array<i64: 16, 128>}, {pipeline_mode = #tpu.pipeline_mode<synchronous>, transform_indices = @transform_1, window_bounds = array<i64: 128, 16>}, {pipeline_mode = #tpu.pipeline_mode<synchronous>, transform_indices = @transform_2, window_bounds = array<i64: 16, 128>}, {pipeline_mode = #tpu.pipeline_mode<synchronous>, transform_indices = @transform_3, window_bounds = array<i64: 128, 128>}, {pipeline_mode = #tpu.pipeline_mode<synchronous>, transform_indices = @transform_4, window_bounds = array<i64: 1, 128>}, {pipeline_mode = #tpu.pipeline_mode<synchronous>, transform_indices = @transform_5, window_bounds = array<i64: 128, 128>}, {pipeline_mode = #tpu.pipeline_mode<synchronous>, transform_indices = @transform_6, window_bounds = array<i64: 16, 128>}]} {
    %c0 = arith.constant 0 : index
    %c0_0 = arith.constant 0 : index
    %0 = vector.load %arg4[%c0, %c0_0] : memref<128x16xf32, #tpu.memory_space<vmem>>, vector<128x16xf32>
    %c0_1 = arith.constant 0 : index
    %c0_2 = arith.constant 0 : index
    %1 = vector.load %arg3[%c0_1, %c0_2] : memref<16x128xf32, #tpu.memory_space<vmem>>, vector<16x128xf32>
    %cst = arith.constant dense<0.000000e+00> : vector<128x128xf32>
    %2 = tpu.matmul %0, %1, %cst {dimension_numbers = #tpu.dot_dimension_numbers<[1], [0], [0], [1], [0, 0, 1, 1], [], []>} : vector<128x16xf32>, vector<16x128xf32>, vector<128x128xf32> -> vector<128x128xf32>
    %c0_3 = arith.constant 0 : index
    %c0_4 = arith.constant 0 : index
    %3 = vector.load %arg6[%c0_3, %c0_4] : memref<128x128xf32, #tpu.memory_space<vmem>>, vector<128x128xf32>
    %cst_5 = arith.constant dense<0.000000e+00> : vector<128x128xf32>
    %4 = tpu.matmul %2, %3, %cst_5 {dimension_numbers = #tpu.dot_dimension_numbers<[1], [0], [0], [1], [0, 0, 1, 1], [], []>} : vector<128x128xf32>, vector<128x128xf32>, vector<128x128xf32> -> vector<128x128xf32>
    %c0_6 = arith.constant 0 : index
    %c0_7 = arith.constant 0 : index
    %5 = vector.load %arg8[%c0_6, %c0_7] : memref<128x128xf32, #tpu.memory_space<vmem>>, vector<128x128xf32>
    tpu.vector_store %arg8[%c0_6, %c0_7], %4 {strides = array<i32>} : memref<128x128xf32, #tpu.memory_space<vmem>>, vector<128x128xf32>,
    %c0_8 = arith.constant 0 : index
    %c0_9 = arith.constant 0 : index
    %6 = vector.load %arg5[%c0_8, %c0_9] : memref<16x128xf32, #tpu.memory_space<vmem>>, vector<16x128xf32>
    %cst_10 = arith.constant dense<0.000000e+00> : vector<16x128xf32>
    %7 = tpu.matmul %6, %4, %cst_10 {dimension_numbers = #tpu.dot_dimension_numbers<[1], [0], [0], [1], [0, 0, 1, 1], [], []>} : vector<16x128xf32>, vector<128x128xf32>, vector<16x128xf32> -> vector<16x128xf32>
    %c0_11 = arith.constant 0 : index
    %c0_12 = arith.constant 0 : index
    %8 = vector.load %arg7[%c0_11, %c0_12] : memref<1x128xf32, #tpu.memory_space<vmem>>, vector<1x128xf32>
    %9 = vector.broadcast %8 : vector<1x128xf32> to vector<16x128xf32>
    %10 = arith.mulf %7, %9 : vector<16x128xf32>
    %cst_13 = arith.constant dense<0.000000e+00> : vector<16xf32>
    %11 = vector.multi_reduction <add>, %10, %cst_13 [1] : vector<16x128xf32> to vector<16xf32>
    %12 = vector.shape_cast %11 : vector<16xf32> to vector<16x1xf32>
    %c0_14 = arith.constant 0 : index
    %c0_15 = arith.constant 0 : index
    %13 = vector.load %arg10[%c0_14, %c0_15] : memref<16x1xf32, #tpu.memory_space<vmem>>, vector<16x1xf32>
    tpu.vector_store %arg10[%c0_14, %c0_15], %12 {strides = array<i32>} : memref<16x1xf32, #tpu.memory_space<vmem>>, vector<16x1xf32>,
    %cst_16 = arith.constant 0.000000e+00 : f32
    %14 = vector.broadcast %cst_16 : f32 to vector<16x128xf32>
    %c0_17 = arith.constant 0 : index
    %c0_18 = arith.constant 0 : index
    %15 = vector.load %arg9[%c0_17, %c0_18] : memref<16x128xf32, #tpu.memory_space<vmem>>, vector<16x128xf32>
    tpu.vector_store %arg9[%c0_17, %c0_18], %14 {strides = array<i32>} : memref<16x128xf32, #tpu.memory_space<vmem>>, vector<16x128xf32>,
    %c0_i32 = arith.constant 0 : i32
    %c8_i32 = arith.constant 8 : i32
    %16 = arith.addi %c0_i32, %c8_i32 : i32
    %c1_i32 = arith.constant 1 : i32
    scf.for %arg11 = %c0_i32 to %16 step %c1_i32  : i32 {
      %17 = arith.index_cast %arg11 : i32 to index
      %18 = memref.load %arg1[%17] : memref<9xi32, #tpu.memory_space<smem>>
      %c1_i32_20 = arith.constant 1 : i32
      %19 = arith.addi %arg11, %c1_i32_20 : i32
      %20 = arith.index_cast %19 : i32 to index
      %21 = memref.load %arg1[%20] : memref<9xi32, #tpu.memory_space<smem>>
      %cst_21 = arith.constant 0.000000e+00 : f32
      %22 = vector.broadcast %cst_21 : f32 to vector<1x128xf32>
      %23 = arith.subi %21, %18 : i32
      %24 = arith.addi %18, %23 : i32
      %c1_i32_22 = arith.constant 1 : i32
      %25 = scf.for %arg12 = %18 to %24 step %c1_i32_22 iter_args(%arg13 = %22) -> (vector<1x128xf32>)  : i32 {
        %28 = arith.index_cast %arg12 : i32 to index
        %29 = memref.load %arg2[%28] : memref<16xi32, #tpu.memory_space<smem>>
        %30 = arith.index_cast %29 : i32 to index
        %c0_24 = arith.constant 0 : index
        %31 = vector.load %arg3[%30, %c0_24] : memref<16x128xf32, #tpu.memory_space<vmem>>, vector<1x128xf32>
        %32 = arith.index_cast %arg12 : i32 to index
        %c0_25 = arith.constant 0 : index
        %33 = vector.load %arg10[%32, %c0_25] : memref<16x1xf32, #tpu.memory_space<vmem>>, vector<1x1xf32>
        %34 = vector.broadcast %33 : vector<1x1xf32> to vector<1x128xf32>
        %35 = arith.mulf %34, %31 : vector<1x128xf32>
        %36 = arith.addf %arg13, %35 : vector<1x128xf32>
        scf.yield %36 : vector<1x128xf32>
      }
      %26 = arith.index_cast %arg11 : i32 to index
      %c0_23 = arith.constant 0 : index
      %27 = vector.load %arg9[%26, %c0_23] : memref<16x128xf32, #tpu.memory_space<vmem>>, vector<1x128xf32>
      tpu.vector_store %arg9[%26, %c0_23], %25 {strides = array<i32>} : memref<16x128xf32, #tpu.memory_space<vmem>>, vector<1x128xf32>,
    }
    %c8_i32_19 = arith.constant 8 : i32
    return
  }
  func.func @transform_0(%arg0: i32, %arg1: memref<9xi32, #tpu.memory_space<smem>>, %arg2: memref<16xi32, #tpu.memory_space<smem>>) -> (i32, i32) {
    %c0_i32 = arith.constant 0 : i32
    %c0_i32_0 = arith.constant 0 : i32
    %c0_i32_1 = arith.constant 0 : i32
    return %c0_i32, %c0_i32_0 : i32, i32
  }
  func.func @transform_1(%arg0: i32, %arg1: memref<9xi32, #tpu.memory_space<smem>>, %arg2: memref<16xi32, #tpu.memory_space<smem>>) -> (i32, i32) {
    %c0_i32 = arith.constant 0 : i32
    %c0_i32_0 = arith.constant 0 : i32
    %c0_i32_1 = arith.constant 0 : i32
    return %c0_i32, %c0_i32_0 : i32, i32
  }
  func.func @transform_2(%arg0: i32, %arg1: memref<9xi32, #tpu.memory_space<smem>>, %arg2: memref<16xi32, #tpu.memory_space<smem>>) -> (i32, i32) {
    %c0_i32 = arith.constant 0 : i32
    %c0_i32_0 = arith.constant 0 : i32
    %c0_i32_1 = arith.constant 0 : i32
    return %c0_i32, %c0_i32_0 : i32, i32
  }
  func.func @transform_3(%arg0: i32, %arg1: memref<9xi32, #tpu.memory_space<smem>>, %arg2: memref<16xi32, #tpu.memory_space<smem>>) -> (i32, i32) {
    %c0_i32 = arith.constant 0 : i32
    %c0_i32_0 = arith.constant 0 : i32
    %c0_i32_1 = arith.constant 0 : i32
    return %c0_i32, %c0_i32_0 : i32, i32
  }
  func.func @transform_4(%arg0: i32, %arg1: memref<9xi32, #tpu.memory_space<smem>>, %arg2: memref<16xi32, #tpu.memory_space<smem>>) -> (i32, i32) {
    %c0_i32 = arith.constant 0 : i32
    %c0_i32_0 = arith.constant 0 : i32
    %c0_i32_1 = arith.constant 0 : i32
    return %c0_i32, %c0_i32_0 : i32, i32
  }
  func.func @transform_5(%arg0: i32, %arg1: memref<9xi32, #tpu.memory_space<smem>>, %arg2: memref<16xi32, #tpu.memory_space<smem>>) -> (i32, i32) {
    %c0_i32 = arith.constant 0 : i32
    %c0_i32_0 = arith.constant 0 : i32
    %c0_i32_1 = arith.constant 0 : i32
    return %c0_i32, %c0_i32_0 : i32, i32
  }
  func.func @transform_6(%arg0: i32, %arg1: memref<9xi32, #tpu.memory_space<smem>>, %arg2: memref<16xi32, #tpu.memory_space<smem>>) -> (i32, i32) {
    %c0_i32 = arith.constant 0 : i32
    %c0_i32_0 = arith.constant 0 : i32
    %c0_i32_1 = arith.constant 0 : i32
    return %c0_i32, %c0_i32_0 : i32, i32
  }
}

</mosaic_0001>

<bundles_post_ra>
// kernel: tpu_custom_call.1
= control target key start
LH: loop header
LB: loop body
LE: loop exit
PB: predicated region body
PF: predicated region fallthrough
CT: control target
= control target key end

     0   :  { %s1245_s0 = inlined_call_operand.vmem [shape: s32[9], index: 0, kind: input, shape index: {}]   ;;  %s1246_s2 = inlined_call_operand.vmem [shape: f32[16,128], index: 2, kind: input, shape index: {}]   ;;  %s1247_s3 = inlined_call_operand.vmem [shape: f32[128,16], index: 3, kind: input, shape index: {}]   ;;  %s1248_s4 = inlined_call_operand.vmem [shape: f32[16,128], index: 4, kind: input, shape index: {}]   ;;  %s1249_s5 = inlined_call_operand.vmem [shape: f32[128,128], index: 5, kind: input, shape index: {}]   ;;  %s1250_s6 = inlined_call_operand.vmem [shape: f32[1,128], index: 6, kind: input, shape index: {}]   ;;  %s1251_s7 = inlined_call_operand.hbm [shape: f32[128,128], index: 7, kind: output, shape index: {0}]   ;;  %s1252_s8 = inlined_call_operand.hbm [shape: f32[16,128], index: 8, kind: output, shape index: {1}]   ;;  %s1253_s1 = inlined_call_operand.vmem [shape: s32[16], index: 1, kind: input, shape index: {}]  }
   0x1   :  { %s14_s29 = sshll.u32 %s1245_s0, 4  ;;  %s18_s10 = sshll.u32 %s1253_s1, 4  ;;  %s15_s29 = int_to_ptr.vmem [resolvable:$true] %s14_s29  ;;  %s19_s10 = int_to_ptr.vmem [resolvable:$true] %s18_s10 }
   0x2   :  { %s911_s11 = scalar_lea.vmem %s15_s29, 16  ;;  %p916_p1 = scmp.lt.s32.totalorder %s15_s29, %s15_s29 }
   0x3   :  { %p912_p0 = scmp.ne.s32.totalorder %s15_s29, %s911_s11  ;;  %p917_p2 = scmp.lt.s32.totalorder %s911_s11, %s911_s11 }
   0x5   :  { %p918_p3 = por %p917_p2, %p916_p1 }
   0x7   :  { %p919_p4 = pnand %p918_p3, %p912_p0 }
   0x9   :  { %922 = shalt.err (!%p919_p4)  }
   0xa   :  { %s1017_s12 = smov [#allocation4]   ;;  %s923_s13 = scalar_lea.vmem %s19_s10, 16 }
   0xb   :  { %17 = dma.vmem_to_smem %s15_s29, 16, %s1017_s12, [#allocation3] }
   0xc   :  { %p924_p5 = scmp.ne.s32.totalorder %s19_s10, %s923_s13  ;;  %p928_p6 = scmp.lt.s32.totalorder %s19_s10, %s19_s10 }
   0xd   :  { %p929_p7 = scmp.lt.s32.totalorder %s923_s13, %s923_s13 }
   0xf   :  { %p930_p8 = por %p929_p7, %p928_p6 }
  0x11   :  { %p931_p9 = pnand %p930_p8, %p924_p5 }
  0x13   :  { %934 = shalt.err (!%p931_p9)  }
  0x14   :  { %s1018_s0 = smov [#allocation5]  }
  0x15   :  { %21 = dma.vmem_to_smem %s19_s10, 16, %s1018_s0, [#allocation3] }
  0x16   :  { %995 = dma.done.wait [#allocation3], 32 }
  0x17   :  { %996 = vsyncadd [#allocation3], 4294967264 }
  0x18   :  { %23 = sfence }
  0x19   :  { %24 = vsyncpa [#allocation7], 0 }
  0x1a   :  { %25 = vsyncpa [#allocation9], 0  ;;  %v52_v0 = vld [vmem:[%s1246_s2] sm:$0xff]  ;;  %v53_v1 = vld [vmem:[%s1246_s2 + $0x8] sm:$0xff]  ;;  %vm54_vm0 = vcmask 130048   ;;  %vm515_vm1 = vcmask 7168  }
  0x1b   :  { %v802_v2 = vpack.c.bf16 %v53_v1, %v52_v0  ;;  %v36_v3 = vld [vmem:[%s1247_s3] sm:$0xff]  ;;  %v37_v4 = vld [vmem:[%s1247_s3 + $0x8] sm:$0xff]  ;;  %v38_v5 = vld [vmem:[%s1247_s3 + $0x10] sm:$0xff] }
  0x1c   :  { %687 = vmatprep.mubr.msk.f32.mxu0 %vm54_vm0, %v36_v3  ;;  %v248_v6 = vld [vmem:[%s1249_s5] sm:$0xff]  ;;  %v249_v7 = vld [vmem:[%s1249_s5 + $0x8] sm:$0xff]  ;;  %v250_v9 = vld [vmem:[%s1249_s5 + $0x10] sm:$0xff] }
  0x1d   :  { %803 = vmatprep.subr.bf16.mxu0 %v802_v2  ;;  %v806_v8 = vpack.c.bf16 %v249_v7, %v248_v6  ;;  %v251_v10 = vld [vmem:[%s1249_s5 + $0x18] sm:$0xff]  ;;  %v252_v13 = vld [vmem:[%s1249_s5 + $0x20] sm:$0xff]  ;;  %v253_v14 = vld [vmem:[%s1249_s5 + $0x28] sm:$0xff] }
  0x1e   :  { %805 = vmatpush3.bf16.msra.mxu0 %v802_v2  ;;  %v39_v11 = vld [vmem:[%s1247_s3 + $0x18] sm:$0xff]  ;;  %v810_v12 = vpack.c.bf16 %v251_v10, %v250_v9  ;;  %v40_v15 = vld [vmem:[%s1247_s3 + $0x20] sm:$0xff]  ;;  %v814_v16 = vpack.c.bf16 %v253_v14, %v252_v13  ;;  %v41_v17 = vld [vmem:[%s1247_s3 + $0x28] sm:$0xff] }
  0x1f   :  { %807 = vmatprep.subr.bf16.mxu1 %v806_v8  ;;  %v254_v18 = vld [vmem:[%s1249_s5 + $0x30] sm:$0xff]  ;;  %v255_v19 = vld [vmem:[%s1249_s5 + $0x38] sm:$0xff]  ;;  %v256_v23 = vld [vmem:[%s1249_s5 + $0x40] sm:$0xff] }
  0x20   :  { %809 = vmatpush3.bf16.msra.mxu1 %v806_v8  ;;  %v42_v20 = vld [vmem:[%s1247_s3 + $0x30] sm:$0xff]  ;;  %v818_v21 = vpack.c.bf16 %v255_v19, %v254_v18  ;;  %v43_v22 = vld [vmem:[%s1247_s3 + $0x38] sm:$0xff]  ;;  %v257_v24 = vld [vmem:[%s1249_s5 + $0x48] sm:$0xff] }
  0x21   :  { %688 = vmatmul.mubr.msk.f32.vlgmr.msra.gmra.mrb[0].mxu0 %vm54_vm0, %v37_v4  ;;  %811 = vmatprep.subr.bf16.mxu1 %v810_v12  ;;  %v44_v25 = vld [vmem:[%s1247_s3 + $0x40] sm:$0xff]  ;;  %v822_v26 = vpack.c.bf16 %v257_v24, %v256_v23  ;;  %v45_v27 = vld [vmem:[%s1247_s3 + $0x48] sm:$0xff]  ;;  %v258_v28 = vld [vmem:[%s1249_s5 + $0x50] sm:$0xff] }
  0x22   :  { %690 = vmatprep.mubr.msk.f32.mxu0 %vm54_vm0, %v38_v5  ;;  %v259_v29 = vld [vmem:[%s1249_s5 + $0x58] sm:$0xff]  ;;  %v46_v30 = vld [vmem:[%s1247_s3 + $0x50] sm:$0xff]  ;;  %v260_v33 = vld [vmem:[%s1249_s5 + $0x60] sm:$0xff] }
  0x23   :  { %v826_v31 = vpack.c.bf16 %v259_v29, %v258_v28  ;;  %v47_v32 = vld [vmem:[%s1247_s3 + $0x58] sm:$0xff]  ;;  %v261_v34 = vld [vmem:[%s1249_s5 + $0x68] sm:$0xff]  ;;  %v48_v35 = vld [vmem:[%s1247_s3 + $0x60] sm:$0xff] }
  0x24   :  { %813 = vmatpush3.bf16.msra.mxu1 %v810_v12  ;;  %v830_v36 = vpack.c.bf16 %v261_v34, %v260_v33  ;;  %v49_v37 = vld [vmem:[%s1247_s3 + $0x68] sm:$0xff]  ;;  %v262_v38 = vld [vmem:[%s1249_s5 + $0x70] sm:$0xff]  ;;  %v263_v39 = vld [vmem:[%s1249_s5 + $0x78] sm:$0xff] }
  0x25   :  { %691 = vmatmul.mubr.msk.f32.gmra.mrb[2].mxu0 %vm54_vm0, %v39_v11  ;;  %815 = vmatprep.subr.bf16.mxu1 %v814_v16  ;;  %v50_v40 = vld [vmem:[%s1247_s3 + $0x70] sm:$0xff]  ;;  %v834_v41 = vpack.c.bf16 %v263_v39, %v262_v38  ;;  %v51_v42 = vld [vmem:[%s1247_s3 + $0x78] sm:$0xff]  ;;  %v425_v59 = vld [vmem:[%s1248_s4] sm:$0xff] }
  0x26   :  { %693 = vmatprep.mubr.msk.f32.mxu0 %vm54_vm0, %v40_v15 }
  0x28   :  { %817 = vmatpush3.bf16.msra.mxu1 %v814_v16 }
  0x29   :  { %694 = vmatmul.mubr.msk.f32.gmra.mrb[4].mxu0 %vm54_vm0, %v41_v17  ;;  %819 = vmatprep.subr.bf16.mxu1 %v818_v21 }
  0x2a   :  { %696 = vmatprep.mubr.msk.f32.mxu0 %vm54_vm0, %v42_v20  ;;  %v426_v20 = vld [vmem:[%s1248_s4 + $0x8] sm:$0xff]  ;;  %s1203_s4 = smov 0  }
  0x2c   :  { %821 = vmatpush3.bf16.msra.mxu1 %v818_v21  ;;  %v614_v21 = vld [vmem:[%s1250_s6] ss:$0 sm:$0xff] }
  0x2d   :  { %697 = vmatmul.mubr.msk.f32.gmra.mrb[6].mxu0 %vm54_vm0, %v43_v22  ;;  %823 = vmatprep.subr.bf16.mxu1 %v822_v26 }
  0x2e   :  { %699 = vmatprep.mubr.msk.f32.mxu0 %vm54_vm0, %v44_v25 }
  0x30   :  { %825 = vmatpush3.bf16.msra.mxu1 %v822_v26  ;;  %v1019_v26 = vmov 0.0  }
  0x31   :  { %700 = vmatmul.mubr.msk.f32.gmra.mrb[8].mxu0 %vm54_vm0, %v45_v27  ;;  %827 = vmatprep.subr.bf16.mxu1 %v826_v31  ;;  %518 = vst [vmem:[#allocation8] sm:$0xff] %v1019_v26  ;;  %519 = vst [vmem:[#allocation8 + $0x8] sm:$0xff] %v1019_v26 }
  0x32   :  { %702 = vmatprep.mubr.msk.f32.mxu0 %vm54_vm0, %v46_v30 }
  0x34   :  { %829 = vmatpush3.bf16.msra.mxu1 %v826_v31 }
  0x35   :  { %703 = vmatmul.mubr.msk.f32.gmra.mrb[10].mxu0 %vm54_vm0, %v47_v32  ;;  %831 = vmatprep.subr.bf16.mxu1 %v830_v36 }
  0x36   :  { %705 = vmatprep.mubr.msk.f32.mxu0 %vm54_vm0, %v48_v35 }
  0x38   :  { %833 = vmatpush3.bf16.msra.mxu1 %v830_v36 }
  0x39   :  { %706 = vmatmul.mubr.msk.f32.gmra.mrb[12].mxu0 %vm54_vm0, %v49_v37  ;;  %835 = vmatprep.subr.bf16.mxu1 %v834_v41 }
  0x3a   :  { %708 = vmatprep.mubr.msk.f32.mxu0 %vm54_vm0, %v50_v40 }
  0x3c   :  { %837 = vmatpush3.bf16.msra.mxu1 %v834_v41 }
  0x3d   :  { %709 = vmatmul.mubr.msk.f32.gmra.mrb[14].mxu0 %vm54_vm0, %v51_v42 }
  0x3e   :  { %799 = vmatprep.mubr.f32.mxu0 %v425_v59 }
  0xf4   :  { %v689_v43 = vpop.f32.mrb[0].mxu0 }
  0xf5   :  { %v169_v44 = vpop.f32.mrb[1].mxu0 }
  0xf6   :  { %743 = vmatprep.mubr.f32.mxu1 %v169_v44 }
  0xf7   :  { %744 = vmatmul.mubr.f32.vlgmr.msra.gmra.mrb[0].mxu1 %v689_v43 }
  0xf8   :  { %v692_v45 = vpop.f32.mrb[2].mxu0 }
  0xf9   :  { %v179_v46 = vpop.f32.mrb[3].mxu0 }
  0xfa   :  { %746 = vmatprep.mubr.f32.mxu1 %v179_v46 }
  0xfb   :  { %747 = vmatmul.mubr.f32.gmra.mrb[2].mxu1 %v692_v45 }
  0xfc   :  { %v695_v47 = vpop.f32.mrb[4].mxu0 }
  0xfd   :  { %v189_v48 = vpop.f32.mrb[5].mxu0 }
  0xfe   :  { %749 = vmatprep.mubr.f32.mxu1 %v189_v48 }
  0xff   :  { %750 = vmatmul.mubr.f32.gmra.mrb[4].mxu1 %v695_v47 }
 0x100   :  { %v698_v49 = vpop.f32.mrb[6].mxu0 }
 0x101   :  { %v199_v50 = vpop.f32.mrb[7].mxu0 }
 0x102   :  { %752 = vmatprep.mubr.f32.mxu1 %v199_v50 }
 0x103   :  { %753 = vmatmul.mubr.f32.gmra.mrb[6].mxu1 %v698_v49 }
 0x104   :  { %v701_v51 = vpop.f32.mrb[8].mxu0 }
 0x105   :  { %v209_v52 = vpop.f32.mrb[9].mxu0 }
 0x106   :  { %755 = vmatprep.mubr.f32.mxu1 %v209_v52 }
 0x107   :  { %756 = vmatmul.mubr.f32.gmra.mrb[8].mxu1 %v701_v51 }
 0x108   :  { %v704_v53 = vpop.f32.mrb[10].mxu0 }
 0x109   :  { %v219_v54 = vpop.f32.mrb[11].mxu0 }
 0x10a   :  { %758 = vmatprep.mubr.f32.mxu1 %v219_v54 }
 0x10b   :  { %759 = vmatmul.mubr.f32.gmra.mrb[10].mxu1 %v704_v53 }
 0x10c   :  { %v707_v55 = vpop.f32.mrb[12].mxu0 }
 0x10d   :  { %v229_v56 = vpop.f32.mrb[13].mxu0 }
 0x10e   :  { %761 = vmatprep.mubr.f32.mxu1 %v229_v56 }
 0x10f   :  { %762 = vmatmul.mubr.f32.gmra.mrb[12].mxu1 %v707_v55 }
 0x110   :  { %v710_v57 = vpop.f32.mrb[14].mxu0 }
 0x111   :  { %v239_v58 = vpop.f32.mrb[15].mxu0 }
 0x112   :  { %764 = vmatprep.mubr.f32.mxu1 %v239_v58 }
 0x113   :  { %765 = vmatmul.mubr.f32.gmra.mrb[14].mxu1 %v710_v57 }
 0x1ca   :  { %v745_v60 = vpop.f32.mrb[0].mxu1 }
 0x1cb   :  { %410 = vst [vmem:[#allocation6 + $0x8] sm:$0xff] %v745_v60  ;;  %v330_v61 = vpop.f32.mrb[1].mxu1 }
 0x1cc   :  { %409 = vst [vmem:[#allocation6] sm:$0xff] %v330_v61  ;;  %v838_v62 = vpack.c.bf16 %v745_v60, %v330_v61 }
 0x1ce   :  { %v748_v63 = vpop.f32.mrb[2].mxu1  ;;  %839 = vmatprep.subr.bf16.mxu0 %v838_v62 }
 0x1cf   :  { %412 = vst [vmem:[#allocation6 + $0x18] sm:$0xff] %v748_v63  ;;  %v340_v0 = vpop.f32.mrb[3].mxu1  ;;  %841 = vmatpush3.bf16.msra.mxu0 %v838_v62 }
 0x1d0   :  { %411 = vst [vmem:[#allocation6 + $0x10] sm:$0xff] %v340_v0  ;;  %v842_v1 = vpack.c.bf16 %v748_v63, %v340_v0 }
 0x1d2   :  { %v751_v2 = vpop.f32.mrb[4].mxu1  ;;  %843 = vmatprep.subr.bf16.mxu0 %v842_v1 }
 0x1d3   :  { %414 = vst [vmem:[#allocation6 + $0x28] sm:$0xff] %v751_v2  ;;  %v350_v3 = vpop.f32.mrb[5].mxu1  ;;  %845 = vmatpush3.bf16.msra.mxu0 %v842_v1 }
 0x1d4   :  { %413 = vst [vmem:[#allocation6 + $0x20] sm:$0xff] %v350_v3  ;;  %v846_v4 = vpack.c.bf16 %v751_v2, %v350_v3 }
 0x1d6   :  { %v754_v5 = vpop.f32.mrb[6].mxu1  ;;  %847 = vmatprep.subr.bf16.mxu0 %v846_v4 }
 0x1d7   :  { %416 = vst [vmem:[#allocation6 + $0x38] sm:$0xff] %v754_v5  ;;  %v360_v6 = vpop.f32.mrb[7].mxu1  ;;  %849 = vmatpush3.bf16.msra.mxu0 %v846_v4 }
 0x1d8   :  { %415 = vst [vmem:[#allocation6 + $0x30] sm:$0xff] %v360_v6  ;;  %v850_v7 = vpack.c.bf16 %v754_v5, %v360_v6 }
 0x1da   :  { %v757_v8 = vpop.f32.mrb[8].mxu1  ;;  %851 = vmatprep.subr.bf16.mxu0 %v850_v7 }
 0x1db   :  { %418 = vst [vmem:[#allocation6 + $0x48] sm:$0xff] %v757_v8  ;;  %v370_v9 = vpop.f32.mrb[9].mxu1  ;;  %853 = vmatpush3.bf16.msra.mxu0 %v850_v7 }
 0x1dc   :  { %417 = vst [vmem:[#allocation6 + $0x40] sm:$0xff] %v370_v9  ;;  %v854_v10 = vpack.c.bf16 %v757_v8, %v370_v9 }
 0x1de   :  { %v760_v11 = vpop.f32.mrb[10].mxu1  ;;  %855 = vmatprep.subr.bf16.mxu0 %v854_v10 }
 0x1df   :  { %420 = vst [vmem:[#allocation6 + $0x58] sm:$0xff] %v760_v11  ;;  %v380_v12 = vpop.f32.mrb[11].mxu1  ;;  %857 = vmatpush3.bf16.msra.mxu0 %v854_v10 }
 0x1e0   :  { %419 = vst [vmem:[#allocation6 + $0x50] sm:$0xff] %v380_v12  ;;  %v858_v13 = vpack.c.bf16 %v760_v11, %v380_v12 }
 0x1e2   :  { %v763_v14 = vpop.f32.mrb[12].mxu1  ;;  %859 = vmatprep.subr.bf16.mxu0 %v858_v13 }
 0x1e3   :  { %422 = vst [vmem:[#allocation6 + $0x68] sm:$0xff] %v763_v14  ;;  %v390_v15 = vpop.f32.mrb[13].mxu1  ;;  %861 = vmatpush3.bf16.msra.mxu0 %v858_v13 }
 0x1e4   :  { %421 = vst [vmem:[#allocation6 + $0x60] sm:$0xff] %v390_v15  ;;  %v862_v16 = vpack.c.bf16 %v763_v14, %v390_v15 }
 0x1e6   :  { %v766_v17 = vpop.f32.mrb[14].mxu1  ;;  %863 = vmatprep.subr.bf16.mxu0 %v862_v16 }
 0x1e7   :  { %424 = vst [vmem:[#allocation6 + $0x78] sm:$0xff] %v766_v17  ;;  %v400_v18 = vpop.f32.mrb[15].mxu1  ;;  %865 = vmatpush3.bf16.msra.mxu0 %v862_v16 }
 0x1e8   :  { %423 = vst [vmem:[#allocation6 + $0x70] sm:$0xff] %v400_v18  ;;  %v866_v19 = vpack.c.bf16 %v766_v17, %v400_v18 }
 0x1ea   :  { %867 = vmatprep.subr.bf16.mxu0 %v866_v19 }
 0x1eb   :  { %869 = vmatpush3.bf16.msra.mxu0 %v866_v19 }
 0x1ee   :  { %800 = vmatmul.mubr.f32.vlgmr.msra.gmra.mrb[16].mxu0 %v426_v20 }
 0x2c1   :  { %v801_v22 = vpop.f32.mrb[16].mxu0 }
 0x2c2   :  { %v493_v23 = vpop.f32.mrb[17].mxu0  ;;  %v510_v25 = vmul.f32 %v801_v22, %v614_v21 }
 0x2c3   :  { %v509_v24 = vmul.f32 %v614_v21, %v493_v23 }
 0x2c5   :  { %511 = vadd.xlane.f32.xlu0 %v509_v24 }
 0x2c9   :  { %513 = vadd.xlane.f32.xlu0 %v510_v25 }
 0x352   :  { %v512_v27 = vpop.xlane.xlu0 %511 }
 0x353   :  { %516 = vst.msk [vmem:[#allocation2] sm:$0xff] %vm515_vm1, %v512_v27 }
 0x356   :  { %v514_v28 = vpop.xlane.xlu0 %513 }
 0x357   :  { %517 = vst.msk [vmem:[#allocation2 + $0x8] sm:$0xff] %vm515_vm1, %v514_v28 }
 0x358 LB: > { %s526_s6 = sld [smem:[#allocation4 + %s1003_s4]]   ;;  %s1210_s1 = sadd.s32 1, %s1003_s4   ;;  %v1013_v29 = vmov 0.0   ;;  %s1003_s4 = sphi %s1203_s4, %s1254_s4  }
 0x359   : > { %s528_s14 = sld [smem:[#allocation4 + %s1210_s1]] }
 0x35f   : > { %p586_p10 = scmp.ge.s32.totalorder %s526_s6, %s528_s14 }
 0x360   : > { %v1005_v30 = vmov (!%p586_p10), 0.0   ;;  %s1009_s15 = smov (!%p586_p10), %s526_s6  }
 0x361   : > { %588 = sbr.rel (%p586_p10) target bundleno = 1007 (0x3ef), region = 59 }
 0x368 LB: >> { %v1020_v31 = vmov 0   ;;  %s539_s16 = scalar_lea.vmem [#allocation2], %s1011_s15  ;;  %s536_s17 = sld [smem:[#allocation5 + %s1011_s15]]  ;;  %s1011_s15 = sphi %s1009_s15, %s532_s15   ;;  %v1007_v30 = vphi %v1005_v30, %v1006_v30  }
 0x369   : >> { %910 = vset.pattern.permute.xlu0 %v1020_v31  ;;  %v540_v32 = vld [vmem:[%s539_s16] sm:$0x1]  ;;  %s532_s15 = sadd.s32 1, %s1011_s15  }
 0x36a   : >> { %543 = vperm.xlu0 %910, %v540_v32   ;;  %p531_p11 = scmp.ge.s32.totalorder %s532_s15, %s528_s14 }
 0x36e   : >> { %s537_s20 = scalar_lea.vmem %s1246_s2, %s536_s17 }
 0x36f   : >> { %v538_v33 = vld [vmem:[%s537_s20] sm:$0x1] }
 0x3e8   : > { %534 = sbr.rel (!%p531_p11) target bundleno = 872 (0x368), region = 65 }
 0x3e9   : >> { %v544_v34 = vpop.permute.xlu0 %543 }
 0x3ea   : >> { %v546_v35 = vmul.f32 %v544_v34, %v538_v33 }
 0x3ec   : >> { %v547_v36 = vadd.f32 %v1007_v30, %v546_v35  }
 0x3ee   : >> { %v1006_v30 = vmov %v547_v36   ;;  %v1014_v29 = vmov (%p531_p11), %v547_v36  }
 0x3ef PF: > { %s548_s21 = scalar_lea.vmem [#allocation8], %s1003_s4  ;;  %p522_p12 = scmp.ge.s32.totalorder %s1210_s1, 8   ;;  %v1015_v29 = vphi %v1013_v29, %v1014_v29  }
 0x3f0   : > { %549 = vst [vmem:[%s548_s21] sm:$0x1] %v1015_v29  ;;  %s1254_s4 = smov %s1210_s1  ;;  %s1021_s22 = smov (%p522_p12), [#allocation6]  }
 0x3f1   :  { %524 = sbr.rel (!%p522_p12) target bundleno = 856 (0x358), region = 76  ;;  %s555_s23 = sshll.u32 (%p522_p12), %s1021_s22, 4  ;;  %s556_s23 = int_to_ptr.vmem [resolvable:$true] %s555_s23 }
 0x3f2   :  { %s935_s24 = scalar_lea.vmem (%p522_p12), %s556_s23, 2048  ;;  %p940_p0 = scmp.lt.s32.totalorder (%p522_p12), %s556_s23, %s556_s23 }
 0x3f3   :  { %p936_p13 = scmp.ne.s32.totalorder (%p522_p12), %s556_s23, %s935_s24  ;;  %p941_p1 = scmp.lt.s32.totalorder (%p522_p12), %s935_s24, %s935_s24 }
 0x3f5   :  { %p942_p2 = por (%p522_p12), %p941_p1, %p940_p0 }
 0x3f7   :  { %p943_p3 = pnand (%p522_p12), %p942_p2, %p936_p13 }
 0x3f9   :  { %946 = shalt.err (!%p943_p3)
}
 0x3fa   :  { %s947_s27 = scalar_lea.hbm %s1251_s7, 2048 }
 0x3fb   :  { %p948_p4 = scmp.ne.s32.totalorder %s1251_s7, %s947_s27  ;;  %p951_p5 = scmp.lt.u32.totalorder %s947_s27, %s1251_s7 }
 0x3fd   :  { %p953_p6 = pnand %p951_p5, %p948_p4 }
 0x3ff   :  { %956 = shalt.err (!%p953_p6)
}
 0x400   :  { %s1022_s2 = smov 128   ;;  %s1023_s10 = smov 8  }
 0x401   :  { %561 = dma.vmem_to_hbm [thread:$0]  %s556_s23, 2048, %s1251_s7, [#allocation7], %s1022_s2, %s1022_s2, %s1023_s10  }
 0x402   :  { %s1024_s11 = smov [#allocation8]  }
 0x403   :  { %s567_s12 = sshll.u32 %s1024_s11, 4  ;;  %s568_s12 = int_to_ptr.vmem [resolvable:$true] %s567_s12 }
 0x404   :  { %s957_s13 = scalar_lea.vmem %s568_s12, 256  ;;  %p962_p8 = scmp.lt.s32.totalorder %s568_s12, %s568_s12 }
 0x405   :  { %p958_p7 = scmp.ne.s32.totalorder %s568_s12, %s957_s13  ;;  %p963_p9 = scmp.lt.s32.totalorder %s957_s13, %s957_s13 }
 0x407   :  { %p964_p10 = por %p963_p9, %p962_p8 }
 0x409   :  { %p965_p11 = pnand %p964_p10, %p958_p7 }
 0x40b   :  { %968 = shalt.err (!%p965_p11)
}
 0x40c   :  { %s969_s6 = scalar_lea.hbm %s1252_s8, 256 }
 0x40d   :  { %p970_p12 = scmp.ne.s32.totalorder %s1252_s8, %s969_s6  ;;  %p973_p13 = scmp.lt.u32.totalorder %s969_s6, %s1252_s8 }
 0x40f   :  { %p975_p0 = pnand %p973_p13, %p970_p12 }
 0x411   :  { %978 = shalt.err (!%p975_p0)
}
 0x412   :  { %573 = dma.vmem_to_hbm [thread:$0]  %s568_s12, 256, %s1252_s8, [#allocation9], %s1022_s2, %s1022_s2, %s1023_s10  }
 0x413   :  { %997 = dma.done.wait [#allocation7], 2048  }
 0x414   :  { %998 = vsyncadd [#allocation7], 4294965248 }
 0x415   :  { %999 = dma.done.wait [#allocation9], 256  }
 0x416   :  { %1000 = vsyncadd [#allocation9], 4294967040 }
 0x417   :  { %580 = vsyncpa [#allocation7], 1 }
 0x418   :  { %581 = vsyncpa [#allocation9], 1 }

</bundles_post_ra>
